<compile_context>
chip_gen: v7x
topology: tpu7x:2x2x1
jax: 0.10.0
libtpu: 0.0.40
codegen_flags: <defaults>
</compile_context>

<pallas_src>
import jax
import jax.numpy as jnp
from jax.experimental import pallas as pl
from jax.experimental.pallas import tpu as pltpu

IN_DIM = 28 * 28   # 784
HID = 256
OUT_DIM = 10
OUT_PAD = 128      # lane-dense (multiple of 128) padded output width


def fcn_kernel(x_ref, w1_ref, b1_ref, w2_ref, b2_ref, o_ref):
    # Cast the streamed f32 x tile to bf16 in-register (VPU cast, hidden under
    # the DMA of the next tile) so the MXU runs at native bf16 rate.
    x = x_ref[...].astype(jnp.bfloat16)
    # Layer 1: (TB,784)bf16 @ (784,256)bf16 -> f32 accumulator.
    h = jnp.dot(x, w1_ref[...], preferred_element_type=jnp.float32)
    h = jnp.maximum(h + b1_ref[...], 0.0)                 # bias + ReLU in f32
    # Layer 2: (TB,256)bf16 @ (256,128)bf16 -> f32, bias, store as bf16.
    logits = jnp.dot(h.astype(jnp.bfloat16), w2_ref[...],
                     preferred_element_type=jnp.float32)
    o_ref[...] = (logits + b2_ref[...]).astype(o_ref.dtype)


def _round_up(x, m):
    return ((x + m - 1) // m) * m


def _vmem_estimate(tb):
    """Rough VMEM footprint (bytes) for a batch tile of tb rows."""
    x_db = 2 * tb * IN_DIM * 4                      # f32 x tile, double-buffered
    out_db = 2 * tb * OUT_PAD * 2                   # bf16 out tile, double-buffered
    weights = 2 * (IN_DIM * HID * 2 + HID * 4 + HID * OUT_PAD * 2 + OUT_PAD * 4)
    body = tb * (IN_DIM * 2 + HID * 4 + HID * 2 + OUT_PAD * 4)   # casts + h + logits
    return x_db + out_db + weights + body


def _choose_tb(B, block_b):
    """Batch tile: multiple of 16 (bf16 sublane packing), >=2 tiles whenever
    there is enough work (keeps both v7x TensorCores busy), and bounded
    padding waste for awkward batch sizes."""
    b16 = _round_up(B, 16)
    if b16 <= 256:                       # tiny batch: one tile, splitting is overhead
        tb = b16
    elif b16 <= 2 * block_b:             # medium batch: exactly 2 tiles
        tb = _round_up(pl.cdiv(b16, 2), 16)
    else:                                # large batch: biggest tile, waste <= ~1/8 of B
        tb = block_b
        while tb > 256 and (_round_up(B, tb) - B) * 8 > B:
            tb //= 2
        tb = _round_up(tb, 16)
    # Keep well inside the 32 MiB scoped-VMEM limit we request below
    # (v7x physical is 64 MiB/TC; v5e/v6e physical is 128 MiB).
    while _vmem_estimate(tb) > (26 << 20) and tb > 256:
        tb = _round_up(tb // 2, 16)
    return tb


def fcn_forward(x_nchw, w1, b1, w2, b2, *, block_b=2048):
    """x_nchw: (B, 1, 28, 28) float32. w1:(784,256) b1:(256,) w2:(256,10) b2:(10,).
    Returns logits (B, 10) float32."""
    B = x_nchw.shape[0]
    # nn.Flatten on NCHW == row-major reshape (metadata only, no HBM pass).
    x = x_nchw.reshape(B, IN_DIM)

    tb = _choose_tb(B, block_b)
    b_pad = _round_up(B, tb)
    if b_pad != B:
        x = jnp.pad(x, ((0, b_pad - B), (0, 0)))

    # Resident weights in bf16; epilogue math stays in f32.
    w1_bf = w1.astype(jnp.bfloat16)
    # Pad layer-2 N dim 10 -> 128 for unmasked, lane-dense output stores.
    w2_bf = jnp.zeros((HID, OUT_PAD), jnp.bfloat16).at[:, :OUT_DIM].set(
        w2.astype(jnp.bfloat16))
    b1_2d = b1.reshape(1, HID).astype(jnp.float32)
    b2_2d = jnp.zeros((1, OUT_PAD), jnp.float32).at[:, :OUT_DIM].set(
        b2.astype(jnp.float32))

    out = pl.pallas_call(
        fcn_kernel,
        out_shape=jax.ShapeDtypeStruct((b_pad, OUT_PAD), jnp.bfloat16),
        grid=(b_pad // tb,),
        in_specs=[
            pl.BlockSpec((tb, IN_DIM), lambda i: (i, 0)),    # x (f32) streams per tile
            pl.BlockSpec((IN_DIM, HID), lambda i: (0, 0)),   # weights resident
            pl.BlockSpec((1, HID), lambda i: (0, 0)),
            pl.BlockSpec((HID, OUT_PAD), lambda i: (0, 0)),
            pl.BlockSpec((1, OUT_PAD), lambda i: (0, 0)),
        ],
        out_specs=pl.BlockSpec((tb, OUT_PAD), lambda i: (i, 0)),
        compiler_params=pltpu.CompilerParams(
            # Batch tiles are independent -> shardable across v7x's 2 TCs.
            dimension_semantics=("parallel",),
            # Raise v5e's 16 MiB scoped default; no-op on v6e/v7x (32 MiB).
            vmem_limit_bytes=32 << 20,
        ),
    )(x, w1_bf, b1_2d, w2_bf, b2_2d)

    # Rows >= B and columns >= 10 of the padded output are junk by design.
    return out[:B, :OUT_DIM].astype(jnp.float32)


def ref_forward(x_nchw, w1, b1, w2, b2):
    """Pure-JAX reference mirroring the kernel's bf16 / f32-accumulate math."""
    B = x_nchw.shape[0]
    x = x_nchw.reshape(B, IN_DIM).astype(jnp.bfloat16)
    h = jnp.dot(x, w1.astype(jnp.bfloat16), preferred_element_type=jnp.float32)
    h = jnp.maximum(h + b1.reshape(1, HID), 0.0)
    out = jnp.dot(h.astype(jnp.bfloat16), w2.astype(jnp.bfloat16),
                  preferred_element_type=jnp.float32)
    out = (out + b2.reshape(1, OUT_DIM)).astype(jnp.bfloat16)   # kernel stores bf16
    return out.astype(jnp.float32)


def init_params(key):
    """Deterministic init mimicking PyTorch nn.Linear default
    (uniform(-1/sqrt(fan_in), 1/sqrt(fan_in))). Weights stored (in, out),
    i.e. transpose of PyTorch's (out, in), so the kernel computes x @ W + b."""
    k1, k2, k3, k4 = jax.random.split(key, 4)
    bound1 = 1.0 / jnp.sqrt(IN_DIM)
    bound2 = 1.0 / jnp.sqrt(HID)
    w1 = jax.random.uniform(k1, (IN_DIM, HID), jnp.float32, -bound1, bound1)
    b1 = jax.random.uniform(k2, (HID,), jnp.float32, -bound1, bound1)
    w2 = jax.random.uniform(k3, (HID, OUT_DIM), jnp.float32, -bound2, bound2)
    b2 = jax.random.uniform(k4, (OUT_DIM,), jnp.float32, -bound2, bound2)
    return w1, b1, w2, b2


if __name__ == "__main__":
    key = jax.random.PRNGKey(0)
    k_x, k_x2, k_p = jax.random.split(key, 3)
    w1, b1, w2, b2 = init_params(k_p)

    # Small MNIST-shaped batch (NCHW), as the forward implies.
    B = 2
    x = jax.random.normal(k_x, (B, 1, 28, 28), dtype=jnp.float32)
    logits = jax.block_until_ready(fcn_forward(x, w1, b1, w2, b2))
    ref = ref_forward(x, w1, b1, w2, b2)
    assert logits.shape == (B, OUT_DIM)
    assert jnp.allclose(logits, ref, atol=1e-2, rtol=1e-2)

    # Second check: awkward batch -> 2 tiles of 272 rows (exercises the
    # multi-tile grid, v7x 2-tile split and the batch-padding path).
    B2 = 520
    x2 = jax.random.normal(k_x2, (B2, 1, 28, 28), dtype=jnp.float32)
    logits2 = jax.block_until_ready(fcn_forward(x2, w1, b1, w2, b2))
    ref2 = ref_forward(x2, w1, b1, w2, b2)
    assert logits2.shape == (B2, OUT_DIM)
    assert jnp.allclose(logits2, ref2, atol=1e-2, rtol=1e-2)

    print("KERNEL_OK")
</pallas_src>

<mosaic_0001>
module attributes {stable_mosaic.version = 11 : i64} {
  func.func @fcn_kernel(%arg0: i32, %arg1: memref<16x784xf32, #tpu.memory_space<vmem>>, %arg2: memref<784x256xbf16, #tpu.memory_space<vmem>>, %arg3: memref<1x256xf32, #tpu.memory_space<vmem>>, %arg4: memref<256x128xbf16, #tpu.memory_space<vmem>>, %arg5: memref<1x128xf32, #tpu.memory_space<vmem>>, %arg6: memref<16x128xbf16, #tpu.memory_space<vmem>>) attributes {dimension_semantics = [#tpu.dimension_semantics<parallel>], iteration_bounds = array<i64: 1>, scalar_prefetch = 0 : i64, scratch_operands = 0 : i64, tpu.core_type = #tpu.core_type<tc>, window_params = [{transform_indices = @transform_0, window_bounds = array<i64: 16, 784>}, {pipeline_mode = #tpu.pipeline_mode<synchronous>, transform_indices = @transform_1, window_bounds = array<i64: 784, 256>}, {pipeline_mode = #tpu.pipeline_mode<synchronous>, transform_indices = @transform_2, window_bounds = array<i64: 1, 256>}, {pipeline_mode = #tpu.pipeline_mode<synchronous>, transform_indices = @transform_3, window_bounds = array<i64: 256, 128>}, {pipeline_mode = #tpu.pipeline_mode<synchronous>, transform_indices = @transform_4, window_bounds = array<i64: 1, 128>}, {transform_indices = @transform_5, window_bounds = array<i64: 16, 128>}]} {
    %c0 = arith.constant 0 : index
    %c0_0 = arith.constant 0 : index
    %0 = vector.load %arg1[%c0, %c0_0] : memref<16x784xf32, #tpu.memory_space<vmem>>, vector<16x784xf32>
    %1 = arith.truncf %0 : vector<16x784xf32> to vector<16x784xbf16>
    %c0_1 = arith.constant 0 : index
    %c0_2 = arith.constant 0 : index
    %2 = vector.load %arg2[%c0_1, %c0_2] : memref<784x256xbf16, #tpu.memory_space<vmem>>, vector<784x256xbf16>
    %cst = arith.constant dense<0.000000e+00> : vector<16x256xf32>
    %3 = tpu.matmul %1, %2, %cst {dimension_numbers = #tpu.dot_dimension_numbers<[1], [0], [0], [1], [0, 0, 1, 1], [], []>} : vector<16x784xbf16>, vector<784x256xbf16>, vector<16x256xf32> -> vector<16x256xf32>
    %c0_3 = arith.constant 0 : index
    %c0_4 = arith.constant 0 : index
    %4 = vector.load %arg3[%c0_3, %c0_4] : memref<1x256xf32, #tpu.memory_space<vmem>>, vector<1x256xf32>
    %5 = vector.broadcast %4 : vector<1x256xf32> to vector<16x256xf32>
    %6 = arith.addf %3, %5 : vector<16x256xf32>
    %cst_5 = arith.constant 0.000000e+00 : f32
    %7 = vector.broadcast %cst_5 : f32 to vector<16x256xf32>
    %8 = arith.maximumf %6, %7 : vector<16x256xf32>
    %9 = arith.truncf %8 : vector<16x256xf32> to vector<16x256xbf16>
    %c0_6 = arith.constant 0 : index
    %c0_7 = arith.constant 0 : index
    %10 = vector.load %arg4[%c0_6, %c0_7] : memref<256x128xbf16, #tpu.memory_space<vmem>>, vector<256x128xbf16>
    %cst_8 = arith.constant dense<0.000000e+00> : vector<16x128xf32>
    %11 = tpu.matmul %9, %10, %cst_8 {dimension_numbers = #tpu.dot_dimension_numbers<[1], [0], [0], [1], [0, 0, 1, 1], [], []>} : vector<16x256xbf16>, vector<256x128xbf16>, vector<16x128xf32> -> vector<16x128xf32>
    %c0_9 = arith.constant 0 : index
    %c0_10 = arith.constant 0 : index
    %12 = vector.load %arg5[%c0_9, %c0_10] : memref<1x128xf32, #tpu.memory_space<vmem>>, vector<1x128xf32>
    %13 = vector.broadcast %12 : vector<1x128xf32> to vector<16x128xf32>
    %14 = arith.addf %11, %13 : vector<16x128xf32>
    %15 = arith.truncf %14 : vector<16x128xf32> to vector<16x128xbf16>
    %c0_11 = arith.constant 0 : index
    %c0_12 = arith.constant 0 : index
    %16 = vector.load %arg6[%c0_11, %c0_12] : memref<16x128xbf16, #tpu.memory_space<vmem>>, vector<16x128xbf16>
    tpu.vector_store %arg6[%c0_11, %c0_12], %15 {strides = array<i32>} : memref<16x128xbf16, #tpu.memory_space<vmem>>, vector<16x128xbf16>,
    return
  }
  func.func @transform_0(%arg0: i32) -> (i32, i32) {
    %c0_i32 = arith.constant 0 : i32
    %c0_i32_0 = arith.constant 0 : i32
    return %arg0, %c0_i32 : i32, i32
  }
  func.func @transform_1(%arg0: i32) -> (i32, i32) {
    %c0_i32 = arith.constant 0 : i32
    %c0_i32_0 = arith.constant 0 : i32
    %c0_i32_1 = arith.constant 0 : i32
    return %c0_i32, %c0_i32_0 : i32, i32
  }
  func.func @transform_2(%arg0: i32) -> (i32, i32) {
    %c0_i32 = arith.constant 0 : i32
    %c0_i32_0 = arith.constant 0 : i32
    %c0_i32_1 = arith.constant 0 : i32
    return %c0_i32, %c0_i32_0 : i32, i32
  }
  func.func @transform_3(%arg0: i32) -> (i32, i32) {
    %c0_i32 = arith.constant 0 : i32
    %c0_i32_0 = arith.constant 0 : i32
    %c0_i32_1 = arith.constant 0 : i32
    return %c0_i32, %c0_i32_0 : i32, i32
  }
  func.func @transform_4(%arg0: i32) -> (i32, i32) {
    %c0_i32 = arith.constant 0 : i32
    %c0_i32_0 = arith.constant 0 : i32
    %c0_i32_1 = arith.constant 0 : i32
    return %c0_i32, %c0_i32_0 : i32, i32
  }
  func.func @transform_5(%arg0: i32) -> (i32, i32) {
    %c0_i32 = arith.constant 0 : i32
    %c0_i32_0 = arith.constant 0 : i32
    return %arg0, %c0_i32 : i32, i32
  }
}

</mosaic_0001>

<bundles_post_ra>
// kernel: tpu_custom_call.1
= control target key start
LH: loop header
LB: loop body
LE: loop exit
PB: predicated region body
PF: predicated region fallthrough
CT: control target
= control target key end

     0   :  { %10 = vsyncpa [#allocation3], 0  ;;  %s1602_s0 = inlined_call_operand.hbm [shape: f32[16,784], index: 0, kind: input, shape index: {}]   ;;  %s1603_s1 = inlined_call_operand.hbm [shape: bf16[784,256], index: 1, kind: input, shape index: {}]   ;;  %s1604_s2 = inlined_call_operand.vmem [shape: f32[1,256], index: 2, kind: input, shape index: {}]   ;;  %s1605_s3 = inlined_call_operand.hbm [shape: bf16[256,128], index: 3, kind: input, shape index: {}]   ;;  %s1606_s4 = inlined_call_operand.vmem [shape: f32[1,128], index: 4, kind: input, shape index: {}]   ;;  %s1607_s5 = inlined_call_operand.hbm [shape: bf16[16,128], index: 5, kind: output, shape index: {}]  }
   0x1   :  { %11 = vsyncpa [#allocation6], 0 }
   0x2   :  { %12 = vsyncpa [#allocation4], 0  ;;  %s1501_s18 = smov [#allocation5]   ;;  %s1407_s22 = scalar_lea.hbm %s1603_s1, 12544 }
   0x3   :  { %s30_s19 = sshll.u32 %s1501_s18, 4  ;;  %p1408_p0 = scmp.ne.s32.totalorder %s1603_s1, %s1407_s22  ;;  %s31_s19 = int_to_ptr.vmem [resolvable:$true] %s30_s19 }
   0x4   :  { %p1411_p1 = scmp.lt.u32.totalorder %s1407_s22, %s1603_s1 }
   0x6   :  { %p1413_p2 = pnand %p1411_p1, %p1408_p0 }
   0x8   :  { %1416 = shalt.err (!%p1413_p2)
}
   0x9   :  { %s1417_s27 = scalar_lea.vmem %s31_s19, 12544  ;;  %p1422_p4 = scmp.lt.s32.totalorder %s31_s19, %s31_s19 }
   0xa   :  { %p1418_p3 = scmp.ne.s32.totalorder %s31_s19, %s1417_s27  ;;  %p1423_p5 = scmp.lt.s32.totalorder %s1417_s27, %s1417_s27 }
   0xc   :  { %p1424_p6 = por %p1423_p5, %p1422_p4 }
   0xe   :  { %p1425_p7 = pnand %p1424_p6, %p1418_p3 }
  0x10   :  { %1428 = shalt.err (!%p1425_p7)
}
  0x11   :  { %s1502_s28 = smov 128   ;;  %s1503_s29 = smov 8  }
  0x12   :  { %36 = dma.hbm_to_vmem [thread:$0]  %s1603_s1, 12544, %s31_s19, [#allocation6], %s1502_s28, %s1502_s28, %s1503_s29  }
  0x13   :  { %s1504_s7 = smov [#allocation2]   ;;  %s1429_s11 = scalar_lea.hbm %s1602_s0, 1792 }
  0x14   :  { %s18_s8 = sshll.u32 %s1504_s7, 4  ;;  %p1430_p8 = scmp.ne.s32.totalorder %s1602_s0, %s1429_s11  ;;  %s19_s8 = int_to_ptr.vmem [resolvable:$true] %s18_s8 }
  0x15   :  { %p1433_p9 = scmp.lt.u32.totalorder %s1429_s11, %s1602_s0 }
  0x17   :  { %p1435_p10 = pnand %p1433_p9, %p1430_p8 }
  0x19   :  { %1438 = shalt.err (!%p1435_p10)
}
  0x1a   :  { %s1439_s16 = scalar_lea.vmem %s19_s8, 1792  ;;  %p1444_p12 = scmp.lt.s32.totalorder %s19_s8, %s19_s8 }
  0x1b   :  { %p1440_p11 = scmp.ne.s32.totalorder %s19_s8, %s1439_s16  ;;  %p1445_p13 = scmp.lt.s32.totalorder %s1439_s16, %s1439_s16 }
  0x1d   :  { %p1446_p0 = por %p1445_p13, %p1444_p12 }
  0x1f   :  { %p1447_p1 = pnand %p1446_p0, %p1440_p11 }
  0x21   :  { %1450 = shalt.err (!%p1447_p1)
}
  0x22   :  { %s1505_s1 = smov 896   ;;  %s1506_s17 = smov 56  }
  0x23   :  { %24 = dma.hbm_to_vmem [thread:$0]  %s1602_s0, 1792, %s19_s8, [#allocation3], %s1505_s1, %s1505_s1, %s1506_s17  }
  0x24   :  { %s1507_s20 = smov [#allocation7]   ;;  %s1451_s24 = scalar_lea.hbm %s1605_s3, 2048 }
  0x25   :  { %s44_s21 = sshll.u32 %s1507_s20, 4  ;;  %p1452_p2 = scmp.ne.s32.totalorder %s1605_s3, %s1451_s24  ;;  %s45_s21 = int_to_ptr.vmem [resolvable:$true] %s44_s21 }
  0x26   :  { %p1455_p3 = scmp.lt.u32.totalorder %s1451_s24, %s1605_s3 }
  0x28   :  { %p1457_p4 = pnand %p1455_p3, %p1452_p2 }
  0x2a   :  { %1460 = shalt.err (!%p1457_p4)
}
  0x2b   :  { %s1461_s29 = scalar_lea.vmem %s45_s21, 2048  ;;  %p1466_p6 = scmp.lt.s32.totalorder %s45_s21, %s45_s21 }
  0x2c   :  { %p1462_p5 = scmp.ne.s32.totalorder %s45_s21, %s1461_s29  ;;  %p1467_p7 = scmp.lt.s32.totalorder %s1461_s29, %s1461_s29 }
  0x2e   :  { %p1468_p8 = por %p1467_p7, %p1466_p6 }
  0x30   :  { %p1469_p9 = pnand %p1468_p8, %p1462_p5 }
  0x32   :  { %1472 = shalt.err (!%p1469_p9)
}
  0x33   :  { %s1508_s0 = smov 64   ;;  %s1509_s30 = smov 4  }
  0x34   :  { %50 = dma.hbm_to_vmem [thread:$0]  %s1605_s3, 2048, %s45_s21, [#allocation6], %s1508_s0, %s1508_s0, %s1509_s30  }
  0x35   :  { %1495 = dma.done.wait [#allocation3], 1792  }
  0x36   :  { %1496 = vsyncadd [#allocation3], 4294965504 }
  0x37   :  { %1497 = dma.done.wait [#allocation6], 14592  }
  0x38   :  { %1498 = vsyncadd [#allocation6], 4294952704  ;;  %v1244_v0 = vld [vmem:[#allocation5 + $0x104] ss:$8 sps:$4 sm:$0xff]   ;;  %v1246_v1 = vld [vmem:[#allocation5 + $0x100] ss:$8 sps:$4 sm:$0xff]  }
  0x39   :  { %731 = vmatprep.subr.bf16.mxu0 %v1244_v0  ;;  %v1247_v2 = vld [vmem:[#allocation5 + $0x114] ss:$8 sps:$4 sm:$0xff]   ;;  %v1249_v3 = vld [vmem:[#allocation5 + $0x110] ss:$8 sps:$4 sm:$0xff]   ;;  %v1250_v4 = vld [vmem:[#allocation5 + $0x124] ss:$8 sps:$4 sm:$0xff]  }
  0x3a   :  { %732 = vmatpush1.bf16.msra.mxu0 %v1246_v1  ;;  %v1252_v5 = vld [vmem:[#allocation5 + $0x120] ss:$8 sps:$4 sm:$0xff]   ;;  %v1253_v6 = vld [vmem:[#allocation5 + $0x134] ss:$8 sps:$4 sm:$0xff]   ;;  %v1255_v7 = vld [vmem:[#allocation5 + $0x130] ss:$8 sps:$4 sm:$0xff]  }
  0x3b   :  { %733 = vmatprep.subr.bf16.mxu0 %v1247_v2  ;;  %v1256_v8 = vld [vmem:[#allocation5 + $0x144] ss:$8 sps:$4 sm:$0xff]   ;;  %v1258_v9 = vld [vmem:[#allocation5 + $0x140] ss:$8 sps:$4 sm:$0xff]   ;;  %v1259_v10 = vld [vmem:[#allocation5 + $0x154] ss:$8 sps:$4 sm:$0xff]  }
  0x3c   :  { %v1261_v11 = vld [vmem:[#allocation5 + $0x150] ss:$8 sps:$4 sm:$0xff]   ;;  %v1286_v12 = vld [vmem:[#allocation5 + $0x4] ss:$8 sps:$4 sm:$0xff]   ;;  %v1288_v13 = vld [vmem:[#allocation5] ss:$8 sps:$4 sm:$0xff]  }
  0x3d   :  { %v1262_v14 = vld [vmem:[#allocation5 + $0x164] ss:$8 sps:$4 sm:$0xff]   ;;  %688 = vmatprep.subr.bf16.mxu1 %v1286_v12  ;;  %v1292_v15 = vld [vmem:[#allocation5 + $0x14] ss:$8 sps:$4 sm:$0xff]   ;;  %v1294_v16 = vld [vmem:[#allocation5 + $0x10] ss:$8 sps:$4 sm:$0xff]  }
  0x3e   :  { %734 = vmatpush1.bf16.msra.mxu0 %v1249_v3  ;;  %689 = vmatpush1.bf16.msra.mxu1 %v1288_v13  ;;  %v1264_v17 = vld [vmem:[#allocation5 + $0x160] ss:$8 sps:$4 sm:$0xff]   ;;  %v1265_v18 = vld [vmem:[#allocation5 + $0x174] ss:$8 sps:$4 sm:$0xff]   ;;  %v1298_v19 = vld [vmem:[#allocation5 + $0x24] ss:$8 sps:$4 sm:$0xff]  }
  0x3f   :  { %735 = vmatprep.subr.bf16.mxu0 %v1250_v4  ;;  %690 = vmatprep.subr.bf16.mxu1 %v1292_v15  ;;  %v66_v20 = vld [vmem:[#allocation2 + $0x18] sm:$0xff]  ;;  %v73_v21 = vld [vmem:[#allocation2 + $0x50] sm:$0xff]  ;;  %v1267_v24 = vld [vmem:[#allocation5 + $0x170] ss:$8 sps:$4 sm:$0xff]   ;;  %vm684_vm0 = vcmask 130048   ;;  %s1511_s10 = smov [#allocation8]  }
  0x40   :  { %v1300_v22 = vld [vmem:[#allocation5 + $0x20] ss:$8 sps:$4 sm:$0xff]   ;;  %v80_v23 = vpack.c.bf16 %v73_v21, %v66_v20  ;;  %v1268_v25 = vld [vmem:[#allocation5 + $0x184] ss:$8 sps:$4 sm:$0xff]   ;;  %v1304_v26 = vld [vmem:[#allocation5 + $0x34] ss:$8 sps:$4 sm:$0xff]  }
  0x41   :  { %v1306_v27 = vld [vmem:[#allocation5 + $0x30] ss:$8 sps:$4 sm:$0xff]   ;;  %v1270_v28 = vld [vmem:[#allocation5 + $0x180] ss:$8 sps:$4 sm:$0xff]   ;;  %v1310_v29 = vld [vmem:[#allocation5 + $0x44] ss:$8 sps:$4 sm:$0xff]  }
  0x42   :  { %736 = vmatpush1.bf16.msra.mxu0 %v1252_v5  ;;  %691 = vmatpush1.bf16.msra.mxu1 %v1294_v16  ;;  %v1271_v30 = vld [vmem:[#allocation5 + $0x194] ss:$8 sps:$4 sm:$0xff]   ;;  %v1312_v31 = vld [vmem:[#allocation5 + $0x40] ss:$8 sps:$4 sm:$0xff]   ;;  %v1273_v32 = vld [vmem:[#allocation5 + $0x190] ss:$8 sps:$4 sm:$0xff]  }
  0x43   :  { %737 = vmatprep.subr.bf16.mxu0 %v1253_v6  ;;  %692 = vmatprep.subr.bf16.mxu1 %v1298_v19  ;;  %v1316_v33 = vld [vmem:[#allocation5 + $0x54] ss:$8 sps:$4 sm:$0xff]   ;;  %v1274_v34 = vld [vmem:[#allocation5 + $0x1a4] ss:$8 sps:$4 sm:$0xff]   ;;  %v1318_v35 = vld [vmem:[#allocation5 + $0x50] ss:$8 sps:$4 sm:$0xff]  }
  0x44   :  { %763 = vmatprep.mubr.bf16.mxu0 %v80_v23  ;;  %v1276_v36 = vld [vmem:[#allocation5 + $0x1a0] ss:$8 sps:$4 sm:$0xff]   ;;  %v1322_v37 = vld [vmem:[#allocation5 + $0x64] ss:$8 sps:$4 sm:$0xff]   ;;  %v1277_v38 = vld [vmem:[#allocation5 + $0x1b4] ss:$8 sps:$4 sm:$0xff]  }
  0x45   :  { %v1324_v39 = vld [vmem:[#allocation5 + $0x60] ss:$8 sps:$4 sm:$0xff]   ;;  %v1279_v40 = vld [vmem:[#allocation5 + $0x1b0] ss:$8 sps:$4 sm:$0xff]   ;;  %v1328_v41 = vld [vmem:[#allocation5 + $0x74] ss:$8 sps:$4 sm:$0xff]  }
  0x46   :  { %738 = vmatpush1.bf16.msra.mxu0 %v1255_v7  ;;  %693 = vmatpush1.bf16.msra.mxu1 %v1300_v22  ;;  %v1280_v42 = vld [vmem:[#allocation5 + $0x1c4] ss:$8 sps:$4 sm:$0xff]   ;;  %v1330_v43 = vld [vmem:[#allocation5 + $0x70] ss:$8 sps:$4 sm:$0xff]   ;;  %v1282_v44 = vld [vmem:[#allocation5 + $0x1c0] ss:$8 sps:$4 sm:$0xff]  }
  0x47   :  { %739 = vmatprep.subr.bf16.mxu0 %v1256_v8  ;;  %694 = vmatprep.subr.bf16.mxu1 %v1304_v26  ;;  %v1334_v45 = vld [vmem:[#allocation5 + $0x84] ss:$8 sps:$4 sm:$0xff]   ;;  %v1283_v46 = vld [vmem:[#allocation5 + $0x1d4] ss:$8 sps:$4 sm:$0xff]   ;;  %v1336_v47 = vld [vmem:[#allocation5 + $0x80] ss:$8 sps:$4 sm:$0xff]  }
  0x48   :  { %v1285_v48 = vld [vmem:[#allocation5 + $0x1d0] ss:$8 sps:$4 sm:$0xff]   ;;  %v1340_v49 = vld [vmem:[#allocation5 + $0x94] ss:$8 sps:$4 sm:$0xff]   ;;  %v1289_v50 = vld [vmem:[#allocation5 + $0x1e4] ss:$8 sps:$4 sm:$0xff]  }
  0x49   :  { %v1342_v51 = vld [vmem:[#allocation5 + $0x90] ss:$8 sps:$4 sm:$0xff]   ;;  %v1291_v52 = vld [vmem:[#allocation5 + $0x1e0] ss:$8 sps:$4 sm:$0xff]   ;;  %v1346_v53 = vld [vmem:[#allocation5 + $0xa4] ss:$8 sps:$4 sm:$0xff]  }
  0x4a   :  { %740 = vmatpush1.bf16.msra.mxu0 %v1258_v9  ;;  %695 = vmatpush1.bf16.msra.mxu1 %v1306_v27  ;;  %v1295_v54 = vld [vmem:[#allocation5 + $0x1f4] ss:$8 sps:$4 sm:$0xff]   ;;  %v1297_v55 = vld [vmem:[#allocation5 + $0x1f0] ss:$8 sps:$4 sm:$0xff]   ;;  %v65_v56 = vld [vmem:[#allocation2 + $0x10] sm:$0xff]  ;;  %s1057_s11 = sshll.u32 %s1511_s10, 4  ;;  %s1058_s11 = int_to_ptr.vmem [resolvable:$true] %s1057_s11 }
  0x4b   :  { %741 = vmatprep.subr.bf16.mxu0 %v1259_v10  ;;  %696 = vmatprep.subr.bf16.mxu1 %v1310_v29  ;;  %v1348_v57 = vld [vmem:[#allocation5 + $0xa0] ss:$8 sps:$4 sm:$0xff]   ;;  %v72_v58 = vld [vmem:[#allocation2 + $0x48] sm:$0xff]  ;;  %v1303_v60 = vld [vmem:[#allocation5 + $0x204] ss:$8 sps:$4 sm:$0xff]   ;;  %s1473_s12 = scalar_lea.vmem %s1058_s11, 128  ;;  %p1478_p11 = scmp.lt.s32.totalorder %s1058_s11, %s1058_s11 }
  0x4c   :  { %v1352_v59 = vld [vmem:[#allocation5 + $0xb4] ss:$8 sps:$4 sm:$0xff]   ;;  %v79_v61 = vpack.c.bf16 %v72_v58, %v65_v56  ;;  %v1354_v62 = vld [vmem:[#allocation5 + $0xb0] ss:$8 sps:$4 sm:$0xff]   ;;  %v1301_v0 = vld [vmem:[#allocation5 + $0x200] ss:$8 sps:$4 sm:$0xff]   ;;  %p1474_p10 = scmp.ne.s32.totalorder %s1058_s11, %s1473_s12  ;;  %p1479_p12 = scmp.lt.s32.totalorder %s1473_s12, %s1473_s12 }
  0x4d   :  { %v64_v63 = vld [vmem:[#allocation2 + $0x8] sm:$0xff]  ;;  %v1358_v1 = vld [vmem:[#allocation5 + $0xc4] ss:$8 sps:$4 sm:$0xff]   ;;  %v71_v2 = vld [vmem:[#allocation2 + $0x40] sm:$0xff] }
  0x4e   :  { %742 = vmatpush1.bf16.msra.mxu0 %v1261_v11  ;;  %697 = vmatpush1.bf16.msra.mxu1 %v1312_v31  ;;  %v1309_v3 = vld [vmem:[#allocation5 + $0x214] ss:$8 sps:$4 sm:$0xff]   ;;  %v78_v4 = vpack.c.bf16 %v71_v2, %v64_v63  ;;  %v1360_v5 = vld [vmem:[#allocation5 + $0xc0] ss:$8 sps:$4 sm:$0xff]   ;;  %v1307_v6 = vld [vmem:[#allocation5 + $0x210] ss:$8 sps:$4 sm:$0xff]   ;;  %p1480_p13 = por %p1479_p12, %p1478_p11 }
  0x4f   :  { %743 = vmatprep.subr.bf16.mxu0 %v1262_v14  ;;  %698 = vmatprep.subr.bf16.mxu1 %v1316_v33  ;;  %v1364_v7 = vld [vmem:[#allocation5 + $0xd4] ss:$8 sps:$4 sm:$0xff]   ;;  %v1315_v8 = vld [vmem:[#allocation5 + $0x224] ss:$8 sps:$4 sm:$0xff]   ;;  %v1313_v11 = vld [vmem:[#allocation5 + $0x220] ss:$8 sps:$4 sm:$0xff]  }
  0x50   :  { %720 = vmatprep.mubr.bf16.mxu1 %v78_v4  ;;  %v68_v9 = vld [vmem:[#allocation2 + $0x28] sm:$0xff]  ;;  %v75_v10 = vld [vmem:[#allocation2 + $0x60] sm:$0xff]  ;;  %v1370_v14 = vld [vmem:[#allocation5 + $0xe4] ss:$8 sps:$4 sm:$0xff]   ;;  %v1510_v31 = vmov 0   ;;  %p1481_p0 = pnand %p1480_p13, %p1474_p10 }
  0x51   :  { %v82_v12 = vpack.c.bf16 %v75_v10, %v68_v9  ;;  %v1366_v13 = vld [vmem:[#allocation5 + $0xd0] ss:$8 sps:$4 sm:$0xff]   ;;  %v1321_v15 = vld [vmem:[#allocation5 + $0x234] ss:$8 sps:$4 sm:$0xff]   ;;  %v70_v22 = vld [vmem:[#allocation2 + $0x38] sm:$0xff] }
  0x52   :  { %744 = vmatpush1.bf16.msra.mxu0 %v1264_v17  ;;  %699 = vmatpush1.bf16.msra.mxu1 %v1318_v35  ;;  %v1319_v16 = vld [vmem:[#allocation5 + $0x230] ss:$8 sps:$4 sm:$0xff]   ;;  %v1327_v17 = vld [vmem:[#allocation5 + $0x244] ss:$8 sps:$4 sm:$0xff]   ;;  %v1376_v19 = vld [vmem:[#allocation5 + $0xf4] ss:$8 sps:$4 sm:$0xff]  }
  0x53   :  { %745 = vmatprep.subr.bf16.mxu0 %v1265_v18  ;;  %700 = vmatprep.subr.bf16.mxu1 %v1322_v37  ;;  %v1372_v18 = vld [vmem:[#allocation5 + $0xe0] ss:$8 sps:$4 sm:$0xff]   ;;  %v1378_v20 = vld [vmem:[#allocation5 + $0xf0] ss:$8 sps:$4 sm:$0xff]   ;;  %v1345_v35 = vld [vmem:[#allocation5 + $0x274] ss:$8 sps:$4 sm:$0xff]  }
  0x54   :  { %v63_v21 = vld [vmem:[#allocation2] sm:$0xff]  ;;  %v1325_v23 = vld [vmem:[#allocation5 + $0x240] ss:$8 sps:$4 sm:$0xff]   ;;  %v76_v33 = vld [vmem:[#allocation2 + $0x68] sm:$0xff] }
  0x55   :  { %v1385_v26 = vld [vmem:[#allocation5 + $0x300] ss:$8 sps:$4 sm:$0xff]   ;;  %v77_v27 = vpack.c.bf16 %v70_v22, %v63_v21  ;;  %v1391_v29 = vld [vmem:[#allocation7 + $0x40] sm:$0xff]   ;;  %v1401_v2 = vld [vmem:[#allocation7 + $0x68] sm:$0xff]  }
  0x56   :  { %746 = vmatpush1.bf16.msra.mxu0 %v1267_v24  ;;  %701 = vmatpush1.bf16.msra.mxu1 %v1324_v39  ;;  %v1387_v24 = vld [vmem:[#allocation5 + $0x304] ss:$8 sps:$4 sm:$0xff]   ;;  %v1392_v37 = vld [vmem:[#allocation7] sm:$0xff]   ;;  %v1393_v39 = vld [vmem:[#allocation7 + $0x48] sm:$0xff]  }
  0x57   :  { %747 = vmatprep.subr.bf16.mxu0 %v1268_v25  ;;  %702 = vmatprep.subr.bf16.mxu1 %v1328_v41  ;;  %v1333_v25 = vld [vmem:[#allocation5 + $0x254] ss:$8 sps:$4 sm:$0xff]   ;;  %v1382_v56 = vld [vmem:[#allocation5 + $0x2e0] ss:$8 sps:$4 sm:$0xff]   ;;  %v1388_v58 = vld [vmem:[#allocation5 + $0x2f0] ss:$8 sps:$4 sm:$0xff]  }
  0x58   :  { %v1394_v41 = vld [vmem:[#allocation7 + $0x8] sm:$0xff]   ;;  %v1398_v63 = vld [vmem:[#allocation7 + $0x18] sm:$0xff]   ;;  %v1403_v4 = vld [vmem:[#allocation7 + $0x70] sm:$0xff]  }
  0x5a   :  { %748 = vmatpush1.bf16.msra.mxu0 %v1270_v28  ;;  %703 = vmatpush1.bf16.msra.mxu1 %v1330_v43  ;;  %v1331_v28 = vld [vmem:[#allocation5 + $0x250] ss:$8 sps:$4 sm:$0xff]   ;;  %v1395_v43 = vld [vmem:[#allocation7 + $0x50] sm:$0xff]  }
  0x5b   :  { %749 = vmatprep.subr.bf16.mxu0 %v1271_v30  ;;  %704 = vmatprep.subr.bf16.mxu1 %v1334_v45  ;;  %v1339_v30 = vld [vmem:[#allocation5 + $0x264] ss:$8 sps:$4 sm:$0xff]  }
  0x5c   :  { %v1396_v45 = vld [vmem:[#allocation7 + $0x10] sm:$0xff]  }
  0x5e   :  { %750 = vmatpush1.bf16.msra.mxu0 %v1273_v32  ;;  %705 = vmatpush1.bf16.msra.mxu1 %v1336_v47  ;;  %v69_v32 = vld [vmem:[#allocation2 + $0x30] sm:$0xff] }
  0x5f   :  { %751 = vmatprep.subr.bf16.mxu0 %v1274_v34  ;;  %706 = vmatprep.subr.bf16.mxu1 %v1340_v49  ;;  %v1337_v34 = vld [vmem:[#allocation5 + $0x260] ss:$8 sps:$4 sm:$0xff]   ;;  %v1363_v47 = vld [vmem:[#allocation5 + $0x2a4] ss:$8 sps:$4 sm:$0xff]   ;;  %v1369_v49 = vld [vmem:[#allocation5 + $0x2b4] ss:$8 sps:$4 sm:$0xff]  }
  0x62   :  { %752 = vmatpush1.bf16.msra.mxu0 %v1276_v36  ;;  %707 = vmatpush1.bf16.msra.mxu1 %v1342_v51  ;;  %v83_v36 = vpack.c.bf16 %v76_v33, %v69_v32  ;;  %v1375_v51 = vld [vmem:[#allocation5 + $0x2c4] ss:$8 sps:$4 sm:$0xff]  }
  0x63   :  { %753 = vmatprep.subr.bf16.mxu0 %v1277_v38  ;;  %708 = vmatprep.subr.bf16.mxu1 %v1346_v53  ;;  %v1343_v38 = vld [vmem:[#allocation5 + $0x270] ss:$8 sps:$4 sm:$0xff]   ;;  %v1381_v53 = vld [vmem:[#allocation5 + $0x2d4] ss:$8 sps:$4 sm:$0xff]  }
  0x66   :  { %754 = vmatpush1.bf16.msra.mxu0 %v1279_v40  ;;  %709 = vmatpush1.bf16.msra.mxu1 %v1348_v57  ;;  %v1351_v40 = vld [vmem:[#allocation5 + $0x284] ss:$8 sps:$4 sm:$0xff]   ;;  %v1390_v57 = vld [vmem:[#allocation5 + $0x2f4] ss:$8 sps:$4 sm:$0xff]  }
  0x67   :  { %755 = vmatprep.subr.bf16.mxu0 %v1280_v42  ;;  %710 = vmatprep.subr.bf16.mxu1 %v1352_v59  ;;  %v1349_v42 = vld [vmem:[#allocation5 + $0x280] ss:$8 sps:$4 sm:$0xff]   ;;  %v67_v59 = vld [vmem:[#allocation2 + $0x20] sm:$0xff] }
  0x6a   :  { %756 = vmatpush1.bf16.msra.mxu0 %v1282_v44  ;;  %711 = vmatpush1.bf16.msra.mxu1 %v1354_v62  ;;  %v1357_v44 = vld [vmem:[#allocation5 + $0x294] ss:$8 sps:$4 sm:$0xff]   ;;  %v1397_v62 = vld [vmem:[#allocation7 + $0x58] sm:$0xff]  }
  0x6b   :  { %757 = vmatprep.subr.bf16.mxu0 %v1283_v46  ;;  %712 = vmatprep.subr.bf16.mxu1 %v1358_v1  ;;  %v1355_v46 = vld [vmem:[#allocation5 + $0x290] ss:$8 sps:$4 sm:$0xff]  }
  0x6c   :  { %v1400_v1 = vld [vmem:[#allocation7 + $0x20] sm:$0xff]  }
  0x6e   :  { %758 = vmatpush1.bf16.msra.mxu0 %v1285_v48  ;;  %713 = vmatpush1.bf16.msra.mxu1 %v1360_v5  ;;  %v1361_v48 = vld [vmem:[#allocation5 + $0x2a0] ss:$8 sps:$4 sm:$0xff]  }
  0x6f   :  { %759 = vmatprep.subr.bf16.mxu0 %v1289_v50  ;;  %714 = vmatprep.subr.bf16.mxu1 %v1364_v7  ;;  %v1367_v50 = vld [vmem:[#allocation5 + $0x2b0] ss:$8 sps:$4 sm:$0xff]   ;;  %v1404_v5 = vld [vmem:[#allocation7 + $0x30] sm:$0xff]   ;;  %v1406_v7 = vld [vmem:[#allocation7 + $0x38] sm:$0xff]  }
  0x72   :  { %760 = vmatpush1.bf16.msra.mxu0 %v1291_v52  ;;  %715 = vmatpush1.bf16.msra.mxu1 %v1366_v13  ;;  %v1373_v52 = vld [vmem:[#allocation5 + $0x2c0] ss:$8 sps:$4 sm:$0xff]  }
  0x73   :  { %761 = vmatprep.subr.bf16.mxu0 %v1295_v54  ;;  %716 = vmatprep.subr.bf16.mxu1 %v1370_v14  ;;  %v1379_v54 = vld [vmem:[#allocation5 + $0x2d0] ss:$8 sps:$4 sm:$0xff]  }
  0x76   :  { %762 = vmatpush1.bf16.msra.mxu0 %v1297_v55  ;;  %717 = vmatpush1.bf16.msra.mxu1 %v1372_v18  ;;  %v1384_v55 = vld [vmem:[#allocation5 + $0x2e4] ss:$8 sps:$4 sm:$0xff]  }
  0x77   :  { %774 = vmatprep.subr.bf16.mxu0 %v1303_v60  ;;  %718 = vmatprep.subr.bf16.mxu1 %v1376_v19  ;;  %v74_v60 = vld [vmem:[#allocation2 + $0x58] sm:$0xff]  ;;  %v182_v19 = vld [vmem:[%s1604_s2] sm:$0x3] }
  0x79   :  { %764 = vmatmul.mubr.bf16.vlgmr.msra.gmra.mrb[0].mxu0 %v79_v61  ;;  %v81_v61 = vpack.c.bf16 %v74_v60, %v67_v59 }
  0x7a   :  { %775 = vmatpush1.bf16.msra.mxu0 %v1301_v0  ;;  %806 = vmatprep.mubr.bf16.mxu0 %v82_v12  ;;  %v1399_v0 = vld [vmem:[#allocation7 + $0x60] sm:$0xff]  }
  0x7b   :  { %776 = vmatprep.subr.bf16.mxu0 %v1309_v3  ;;  %719 = vmatpush1.bf16.msra.mxu1 %v1378_v20  ;;  %v1402_v3 = vld [vmem:[#allocation7 + $0x28] sm:$0xff]  }
  0x7c   :  { %817 = vmatprep.subr.bf16.mxu1 %v1387_v24 }
  0x7e   :  { %777 = vmatpush1.bf16.msra.mxu0 %v1307_v6  ;;  %721 = vmatmul.mubr.bf16.vlgmr.msra.gmra.mrb[0].mxu1 %v77_v27  ;;  %v1405_v6 = vld [vmem:[#allocation7 + $0x78] sm:$0xff]  }
  0x7f   :  { %778 = vmatprep.subr.bf16.mxu0 %v1315_v8  ;;  %818 = vmatpush1.bf16.msra.mxu1 %v1385_v26 }
  0x80   :  { %849 = vmatprep.mubr.bf16.mxu1 %v1510_v31  ;;  %1195 = vmatprep.subr.bf16.mxu1 %v1391_v29 }
  0x82   :  { %779 = vmatpush1.bf16.msra.mxu0 %v1313_v11 }
  0x83   :  { %780 = vmatprep.subr.bf16.mxu0 %v1321_v15 }
  0x86   :  { %781 = vmatpush1.bf16.msra.mxu0 %v1319_v16  ;;  %1168 = vmatmul.mubr.msk.bf16.vlgmr.msra.gmra.mrb[4].mxu1 %vm684_vm0, %v83_v36  ;;  %v184_v16 = vlaneseq }
  0x87   :  { %782 = vmatprep.subr.bf16.mxu0 %v1327_v17  ;;  %1196 = vmatpush3.bf16.msra.mxu1 %v1392_v37 }
  0x88   :  { %1197 = vmatprep.subr.bf16.mxu1 %v1393_v39  ;;  %v185_v17 = vshrl.u32 %v184_v16, 7 }
  0x8a   :  { %783 = vmatpush1.bf16.msra.mxu0 %v1325_v23  ;;  %v186_v18 = vsub.s32 0, %v185_v17  ;;  %v190_v20 = vsub.s32 1, %v185_v17 }
  0x8b   :  { %784 = vmatprep.subr.bf16.mxu0 %v1333_v25  ;;  %1198 = vmatpush3.bf16.msra.mxu1 %v1394_v41 }
  0x8c   :  { %1199 = vmatprep.subr.bf16.mxu1 %v1395_v43  ;;  %v187_v21 = vrot.slane %v182_v19, %v186_v18  ;;  %v191_v22 = vrot.slane %v182_v19, %v190_v20 }
  0x8e   :  { %785 = vmatpush1.bf16.msra.mxu0 %v1331_v28 }
  0x8f   :  { %786 = vmatprep.subr.bf16.mxu0 %v1339_v30  ;;  %1200 = vmatpush3.bf16.msra.mxu1 %v1396_v45 }
  0x90   :  { %1201 = vmatprep.subr.bf16.mxu1 %v1397_v62 }
  0x92   :  { %787 = vmatpush1.bf16.msra.mxu0 %v1337_v34 }
  0x93   :  { %788 = vmatprep.subr.bf16.mxu0 %v1345_v35  ;;  %1202 = vmatpush3.bf16.msra.mxu1 %v1398_v63 }
  0x94   :  { %1203 = vmatprep.subr.bf16.mxu1 %v1399_v0 }
  0x96   :  { %789 = vmatpush1.bf16.msra.mxu0 %v1343_v38 }
  0x97   :  { %790 = vmatprep.subr.bf16.mxu0 %v1351_v40  ;;  %1204 = vmatpush3.bf16.msra.mxu1 %v1400_v1 }
  0x98   :  { %1205 = vmatprep.subr.bf16.mxu1 %v1401_v2 }
  0x9a   :  { %791 = vmatpush1.bf16.msra.mxu0 %v1349_v42 }
  0x9b   :  { %792 = vmatprep.subr.bf16.mxu0 %v1357_v44  ;;  %1206 = vmatpush3.bf16.msra.mxu1 %v1402_v3 }
  0x9c   :  { %1207 = vmatprep.subr.bf16.mxu1 %v1403_v4 }
  0x9e   :  { %793 = vmatpush1.bf16.msra.mxu0 %v1355_v46 }
  0x9f   :  { %794 = vmatprep.subr.bf16.mxu0 %v1363_v47  ;;  %1208 = vmatpush3.bf16.msra.mxu1 %v1404_v5 }
  0xa0   :  { %1209 = vmatprep.subr.bf16.mxu1 %v1405_v6 }
  0xa2   :  { %795 = vmatpush1.bf16.msra.mxu0 %v1361_v48 }
  0xa3   :  { %796 = vmatprep.subr.bf16.mxu0 %v1369_v49  ;;  %1210 = vmatpush3.bf16.msra.mxu1 %v1406_v7  ;;  %v1169_v49 = vld [vmem:[%s1606_s4] ss:$0 sm:$0xff] }
  0xa6   :  { %797 = vmatpush1.bf16.msra.mxu0 %v1367_v50 }
  0xa7   :  { %798 = vmatprep.subr.bf16.mxu0 %v1375_v51 }
  0xaa   :  { %799 = vmatpush1.bf16.msra.mxu0 %v1373_v52 }
  0xab   :  { %800 = vmatprep.subr.bf16.mxu0 %v1381_v53 }
  0xae   :  { %801 = vmatpush1.bf16.msra.mxu0 %v1379_v54 }
  0xaf   :  { %802 = vmatprep.subr.bf16.mxu0 %v1384_v55 }
  0xb2   :  { %803 = vmatpush1.bf16.msra.mxu0 %v1382_v56 }
  0xb3   :  { %804 = vmatprep.subr.bf16.mxu0 %v1390_v57 }
  0xb6   :  { %805 = vmatpush1.bf16.msra.mxu0 %v1388_v58 }
  0xb9   :  { %807 = vmatmul.mubr.bf16.vlgmr.msra.gmra.mrb[0].mxu0 %v81_v61 }
 0x151   :  { %v722_v8 = vpop.f32.mrb[0].mxu1 }
 0x152   :  { %v724_v9 = vpop.f32.mrb[1].mxu1  ;;  %v723_v23 = vadd.f32 %v722_v8, %v187_v21 }
 0x153   :  { %v726_v10 = vpop.f32.mrb[2].mxu1  ;;  %v725_v24 = vadd.f32 %v724_v9, %v191_v22 }
 0x154   :  { %v728_v11 = vpop.f32.mrb[3].mxu1  ;;  %v727_v26 = vadd.f32 %v726_v10, %v187_v21 }
 0x155   :  { %v729_v29 = vadd.f32 %v728_v11, %v191_v22 }
 0x159   :  { %v851_v12 = vpop.f32.mrb[4].mxu1 }
 0x15a   :  { %v853_v13 = vpop.f32.mrb[5].mxu1 }
 0x15b   :  { %v855_v14 = vpop.f32.mrb[6].mxu1 }
 0x15c   :  { %v857_v15 = vpop.f32.mrb[7].mxu1 }
 0x18c   :  { %v808_v25 = vpop.f32.mrb[0].mxu0 }
 0x18d   :  { %v1218_v27 = vadd.f32 %v808_v25, %v723_v23  ;;  %v810_v28 = vpop.f32.mrb[1].mxu0 }
 0x18e   :  { %v1221_v30 = vadd.f32 %v810_v28, %v725_v24  ;;  %v812_v31 = vpop.f32.mrb[2].mxu0 }
 0x18f   :  { %v1219_v32 = vadd.f32 %v1218_v27, %v851_v12  ;;  %v1224_v33 = vadd.f32 %v812_v31, %v727_v26  ;;  %v814_v34 = vpop.f32.mrb[3].mxu0 }
 0x190   :  { %v1222_v35 = vadd.f32 %v1221_v30, %v853_v13  ;;  %v1227_v36 = vadd.f32 %v814_v34, %v729_v29 }
 0x191   :  { %v1225_v37 = vadd.f32 %v1224_v33, %v855_v14  ;;  %v860_v39 = vmax.f32 %v1219_v32, 0.0 }
 0x192   :  { %v1228_v38 = vadd.f32 %v1227_v36, %v857_v15  ;;  %v861_v41 = vmax.f32 %v1222_v35, 0.0 }
 0x193   :  { %v862_v40 = vmax.f32 %v1225_v37, 0.0 }
 0x194   :  { %v863_v42 = vmax.f32 %v1228_v38, 0.0 }
 0x195   :  { %v864_v43 = vpack.c.bf16 %v862_v40, %v860_v39 }
 0x196   :  { %v865_v44 = vpack.c.bf16 %v863_v42, %v861_v41 }
 0x198   :  { %1033 = vmatprep.mubr.bf16.mxu1 %v865_v44 }
 0x199   :  { %1034 = vmatmul.mubr.bf16.vlgmr.msra.gmra.mrb[8].mxu1 %v864_v43 }
 0x26c   :  { %v1211_v45 = vpop.f32.mrb[8].mxu1 }
 0x26d   :  { %v1212_v46 = vpop.f32.mrb[9].mxu1 }
 0x26e   :  { %v1213_v47 = vadd.f32 %v1212_v46, %v1211_v45  ;;  %v1214_v48 = vpop.f32.mrb[10].mxu1 }
 0x26f   :  { %v1215_v50 = vpop.f32.mrb[11].mxu1 }
 0x270   :  { %v1216_v51 = vadd.f32 %v1215_v50, %v1214_v48  ;;  %v1036_v52 = vadd.f32 %v1213_v47, %v1169_v49 }
 0x272   :  { %v1039_v53 = vadd.f32 %v1216_v51, %v1169_v49 }
 0x274   :  { %v1193_v54 = vpack.c.bf16 %v1039_v53, %v1036_v52 }
 0x276   :  { %1194 = vst [vmem:[#allocation8] sm:$0xff] %v1193_v54  }
 0x277   :  { %1484 = shalt.err (!%p1481_p0)
}
 0x278   :  { %s1485_s4 = scalar_lea.hbm %s1607_s5, 128 }
 0x279   :  { %p1486_p1 = scmp.ne.s32.totalorder %s1607_s5, %s1485_s4  ;;  %p1489_p2 = scmp.lt.u32.totalorder %s1485_s4, %s1607_s5 }
 0x27b   :  { %p1491_p3 = pnand %p1489_p2, %p1486_p1 }
 0x27d   :  { %1494 = shalt.err (!%p1491_p3)
}
 0x27e   :  { %1063 = dma.vmem_to_hbm [thread:$0]  %s1058_s11, 128, %s1607_s5, [#allocation4], %s1508_s0, %s1508_s0, %s1509_s30  }
 0x27f   :  { %1499 = dma.done.wait [#allocation4], 128  }
 0x280   :  { %1500 = vsyncadd [#allocation4], 4294967168 }
 0x281   :  { %1067 = vsyncpa [#allocation3], 1 }
 0x282   :  { %1068 = vsyncpa [#allocation6], 1 }
 0x283   :  { %1069 = vsyncpa [#allocation4], 1 }

</bundles_post_ra>
